<compile_context>
chip_gen: v7x
topology: tpu7x:2x2x1
jax: 0.10.0
libtpu: 0.0.40
codegen_flags: <defaults>
</compile_context>

<pallas_src>
import functools

import jax
import jax.numpy as jnp
from jax.experimental import pallas as pl
from jax.experimental.pallas import tpu as pltpu


def lstm_kernel(x_ref, w_in_ref, b_all_ref, w_comb_ref, w_fc_ref, b_fc_ref,
                out_ref, addend_ref, *, T, B, H):
    H2, H4 = 2 * H, 4 * H

    # Hoisted projection: one ((T+1)*B, I) @ (I, 8H) matmul covers every step's
    # layer-0 input gates plus both layers' biases, already in combined gate
    # layout. Row block t+1 is exactly the addend needed by loop iteration t.
    addend_ref[...] = (
        jnp.dot(x_ref[...], w_in_ref[...], preferred_element_type=jnp.float32)
        + b_all_ref[...])

    w_comb = w_comb_ref[...]                    # (2H, 8H) combined layout

    def combined_cell(gates, c):
        # gates: (B, 8H) in [i0 i1 | f0 f1 | g0 g1 | o0 o1] layout
        # c:     (B, 2H) = [c_l0 | c_l1]
        # sigmoid covers the whole first (B, 4H)=(8,128) vreg (i and f), tanh
        # only the g columns, sigmoid the o columns: ~half the EUP work of
        # applying both nonlinearities to the full tile.
        sig_if = jax.nn.sigmoid(gates[:, :H4])
        g = jnp.tanh(gates[:, H4:H4 + H2])
        o = jax.nn.sigmoid(gates[:, H4 + H2:])
        i = sig_if[:, :H2]
        f = sig_if[:, H2:]
        c_new = f * c + i * g
        h_new = o * jnp.tanh(c_new)
        return h_new, c_new
        # NOTE: on v6e/v7x these transcendentals could run in bf16 for ~2x EUP
        # throughput at a small precision cost; kept f32 for PyTorch parity.

    # ---- peeled step 0: h/c start at zero, so no recurrent matmul ----
    # The layer-1 half of this update is junk (only b1 sits in its columns);
    # mask it back to the correct zero initial state (VPU-only, no shuffles).
    zeros2h = jnp.zeros((B, H2), jnp.float32)
    h_raw, c_raw = combined_cell(addend_ref[0:B, :], zeros2h)
    lane = jax.lax.broadcasted_iota(jnp.int32, (B, H2), 1)
    l0_mask = (lane < H).astype(jnp.float32)
    h_cat = h_raw * l0_mask                     # [h0_0 | 0]
    c_cat = c_raw * l0_mask                     # [c0_0 | 0]

    # ---- T fused iterations (statically unrolled; T is small) ----
    # Iteration t: one MXU push produces the layer-1 gates for step t and the
    # layer-0 recurrent term for step t+1; both cell updates are merged into a
    # single (B, 2H)-wide elementwise block.
    # v5e note: the (8,2H)@(2H,8H)=(8,64)@(64,256) dot exceeds a 128x128 MXU and
    # splits into two passes there; they share the LHS and are independent, so
    # they can overlap (verify in a bundle dump if tuning specifically for v5e).
    for t in range(T):
        m = jnp.dot(h_cat, w_comb, preferred_element_type=jnp.float32)
        gates = m + addend_ref[(t + 1) * B:(t + 2) * B, :]
        h_cat, c_cat = combined_cell(gates, c_cat)
    # After the last iteration h_cat = [junk h0_T | h1_{T-1}]; only the layer-1
    # half is read below, so the junk never propagates.

    # dropout(out[:, -1, :]) is identity in eval mode.
    # fc: (B, H) x (H,) -> (B, 1) as a VPU multiply + lane reduction (no MXU).
    h1 = h_cat[:, H:]
    out_ref[...] = ((h1 * w_fc_ref[...]).sum(axis=-1, keepdims=True)
                    + b_fc_ref[...])


def lstm_forward(x, params):
    """x: (B, T, I) float32, batch_first like the PyTorch module. Returns (B, 1)."""
    B, T, I = x.shape
    H = params["w_hh0"].shape[0]

    # Pad batch to a full 8-sublane vreg. NOTE: at B=2, 6/8 sublanes are idle;
    # if the call site has several independent sequences, pack up to 8 (or more)
    # per call essentially for free instead of one call per tiny batch.
    B_pad = ((B + 7) // 8) * 8

    # Time-major, batch-padded, plus ONE extra zero time-block so the final
    # fused iteration has a well-defined (discarded) layer-0 addend.
    x_tm = jnp.transpose(x, (1, 0, 2))                          # (T, B, I)
    x_tm = jnp.pad(x_tm, ((0, 1), (0, B_pad - B), (0, 0)))      # (T+1, B_pad, I)
    x_ext = x_tm.reshape((T + 1) * B_pad, I)

    def to_comb(m, layer):
        # Scatter per-layer gate columns [i|f|g|o] (H wide each) into the
        # combined layout [i0 i1 | f0 f1 | g0 g1 | o0 o1] (2H per gate group).
        r = m.shape[0]
        out = jnp.zeros((r, 4, 2, H), m.dtype)
        out = out.at[:, :, layer, :].set(m.reshape(r, 4, H))
        return out.reshape(r, 8 * H)

    # W_comb = [[w_hh0 | w_ih1], [0 | w_hh1]] with gate columns in combined order.
    w_in = to_comb(params["w_ih0"], 0)                                    # (I, 8H)
    b_all = to_comb(params["b0"], 0) + to_comb(params["b1"], 1)           # (1, 8H)
    w_comb = jnp.concatenate(
        [to_comb(params["w_hh0"], 0) + to_comb(params["w_ih1"], 1),
         to_comb(params["w_hh1"], 1)],
        axis=0)                                                           # (2H, 8H)
    w_fc_row = params["w_fc"].T                                           # (1, H)

    kernel = functools.partial(lstm_kernel, T=T, B=B_pad, H=H)
    vmem = lambda: pl.BlockSpec(memory_space=pltpu.MemorySpace.VMEM)

    out = pl.pallas_call(
        kernel,
        out_shape=jax.ShapeDtypeStruct((B_pad, 1), jnp.float32),
        in_specs=[vmem() for _ in range(6)],
        out_specs=vmem(),
        scratch_shapes=[pltpu.VMEM(((T + 1) * B_pad, 8 * H), jnp.float32)],
        # Working set <100 KB: far under VMEM on every generation (incl. v7x's
        # 64 MiB). The recurrence is strictly serial, so no grid / streaming /
        # cross-TensorCore sharding is worthwhile at these sizes; only add a
        # "parallel" batch grid axis once the real batch reaches >=16 rows.
    )(x_ext, w_in, b_all, w_comb, w_fc_row, params["b_fc"])

    return out[:B]


def init_params(key, input_size, hidden_size):
    """Deterministic init mirroring PyTorch's U(-1/sqrt(H), 1/sqrt(H)) LSTM init."""
    bound = 1.0 / float(jnp.sqrt(jnp.float32(hidden_size)))
    keys = jax.random.split(key, 10)

    def u(k, shape):
        return jax.random.uniform(k, shape, jnp.float32, -bound, bound)

    H4 = 4 * hidden_size
    # PyTorch stores weight_ih_l* as (4H, in); we keep the transpose (in, 4H).
    # b_ih + b_hh are folded into a single (1, 4H) bias per layer.
    params = {
        "w_ih0": u(keys[0], (input_size, H4)),
        "w_hh0": u(keys[1], (hidden_size, H4)),
        "b0":    u(keys[2], (1, H4)) + u(keys[3], (1, H4)),
        "w_ih1": u(keys[4], (hidden_size, H4)),
        "w_hh1": u(keys[5], (hidden_size, H4)),
        "b1":    u(keys[6], (1, H4)) + u(keys[7], (1, H4)),
        "w_fc":  u(keys[8], (hidden_size, 1)),   # nn.Linear(H, 1) weight^T
        "b_fc":  u(keys[9], (1, 1)),
    }
    return params


if __name__ == "__main__":
    # Small, deterministic shapes consistent with the module's forward:
    # batch=2, seq_len=8, input_size=8, hidden_size=32, num_layers=2.
    B, T, I, H = 2, 8, 8, 32
    key = jax.random.PRNGKey(0)
    k_x, k_p = jax.random.split(key)

    x = jax.random.normal(k_x, (B, T, I), dtype=jnp.float32)
    params = init_params(k_p, I, H)

    out = lstm_forward(x, params)
    out = jax.block_until_ready(out)
    assert out.shape == (B, 1) and out.dtype == jnp.float32
    print("KERNEL_OK")
</pallas_src>

<mosaic_0001>
module attributes {stable_mosaic.version = 11 : i64} {
  func.func @lstm_kernel(%arg0: memref<72x8xf32, #tpu.memory_space<vmem>>, %arg1: memref<8x256xf32, #tpu.memory_space<vmem>>, %arg2: memref<1x256xf32, #tpu.memory_space<vmem>>, %arg3: memref<64x256xf32, #tpu.memory_space<vmem>>, %arg4: memref<1x32xf32, #tpu.memory_space<vmem>>, %arg5: memref<1x1xf32, #tpu.memory_space<vmem>>, %arg6: memref<8x1xf32, #tpu.memory_space<vmem>>, %arg7: memref<72x256xf32, #tpu.memory_space<vmem>>) attributes {dimension_semantics = [], scalar_prefetch = 0 : i64, scratch_operands = 1 : i64, tpu.core_type = #tpu.core_type<tc>} {
    %c0 = arith.constant 0 : index
    %c0_0 = arith.constant 0 : index
    %0 = vector.load %arg0[%c0, %c0_0] : memref<72x8xf32, #tpu.memory_space<vmem>>, vector<72x8xf32>
    %c0_1 = arith.constant 0 : index
    %c0_2 = arith.constant 0 : index
    %1 = vector.load %arg1[%c0_1, %c0_2] : memref<8x256xf32, #tpu.memory_space<vmem>>, vector<8x256xf32>
    %cst = arith.constant dense<0.000000e+00> : vector<72x256xf32>
    %2 = tpu.matmul %0, %1, %cst {dimension_numbers = #tpu.dot_dimension_numbers<[1], [0], [0], [1], [0, 0, 1, 1], [], []>} : vector<72x8xf32>, vector<8x256xf32>, vector<72x256xf32> -> vector<72x256xf32>
    %c0_3 = arith.constant 0 : index
    %c0_4 = arith.constant 0 : index
    %3 = vector.load %arg2[%c0_3, %c0_4] : memref<1x256xf32, #tpu.memory_space<vmem>>, vector<1x256xf32>
    %4 = vector.broadcast %3 : vector<1x256xf32> to vector<72x256xf32>
    %5 = arith.addf %2, %4 : vector<72x256xf32>
    %c0_5 = arith.constant 0 : index
    %c0_6 = arith.constant 0 : index
    %6 = vector.load %arg7[%c0_5, %c0_6] : memref<72x256xf32, #tpu.memory_space<vmem>>, vector<72x256xf32>
    tpu.vector_store %arg7[%c0_5, %c0_6], %5 {strides = array<i32>} : memref<72x256xf32, #tpu.memory_space<vmem>>, vector<72x256xf32>,
    %c0_7 = arith.constant 0 : index
    %c0_8 = arith.constant 0 : index
    %7 = vector.load %arg3[%c0_7, %c0_8] : memref<64x256xf32, #tpu.memory_space<vmem>>, vector<64x256xf32>
    %cst_9 = arith.constant 0.000000e+00 : f32
    %8 = vector.broadcast %cst_9 : f32 to vector<8x64xf32>
    %c0_10 = arith.constant 0 : index
    %c0_11 = arith.constant 0 : index
    %9 = vector.load %arg7[%c0_10, %c0_11] : memref<72x256xf32, #tpu.memory_space<vmem>>, vector<8x256xf32>
    %10 = vector.extract_strided_slice %9 {offsets = [0, 0], sizes = [8, 128], strides = [1, 1]} : vector<8x256xf32> to vector<8x128xf32>
    %11 = arith.negf %10 : vector<8x128xf32>
    %12 = math.exp %11 : vector<8x128xf32>
    %cst_12 = arith.constant 1.000000e+00 : f32
    %13 = vector.broadcast %cst_12 : f32 to vector<8x128xf32>
    %14 = arith.addf %13, %12 : vector<8x128xf32>
    %15 = arith.divf %13, %14 : vector<8x128xf32>
    %16 = vector.extract_strided_slice %9 {offsets = [0, 128], sizes = [8, 64], strides = [1, 1]} : vector<8x256xf32> to vector<8x64xf32>
    %17 = math.tanh %16 : vector<8x64xf32>
    %18 = vector.extract_strided_slice %9 {offsets = [0, 192], sizes = [8, 64], strides = [1, 1]} : vector<8x256xf32> to vector<8x64xf32>
    %19 = arith.negf %18 : vector<8x64xf32>
    %20 = math.exp %19 : vector<8x64xf32>
    %cst_13 = arith.constant 1.000000e+00 : f32
    %21 = vector.broadcast %cst_13 : f32 to vector<8x64xf32>
    %22 = arith.addf %21, %20 : vector<8x64xf32>
    %23 = arith.divf %21, %22 : vector<8x64xf32>
    %24 = vector.extract_strided_slice %15 {offsets = [0, 0], sizes = [8, 64], strides = [1, 1]} : vector<8x128xf32> to vector<8x64xf32>
    %25 = vector.extract_strided_slice %15 {offsets = [0, 64], sizes = [8, 64], strides = [1, 1]} : vector<8x128xf32> to vector<8x64xf32>
    %26 = arith.mulf %25, %8 : vector<8x64xf32>
    %27 = arith.mulf %24, %17 : vector<8x64xf32>
    %28 = arith.addf %26, %27 : vector<8x64xf32>
    %29 = math.tanh %28 : vector<8x64xf32>
    %30 = arith.mulf %23, %29 : vector<8x64xf32>
    %31 = tpu.iota {dimensions = array<i32: 1>} : vector<8x64xi32>
    %c32_i32 = arith.constant 32 : i32
    %32 = vector.broadcast %c32_i32 : i32 to vector<8x64xi32>
    %33 = arith.cmpi slt, %31, %32 : vector<8x64xi32>
    %34 = arith.extui %33 : vector<8x64xi1> to vector<8x64xi32>
    %35 = arith.sitofp %34 : vector<8x64xi32> to vector<8x64xf32>
    %36 = arith.mulf %30, %35 : vector<8x64xf32>
    %37 = arith.mulf %28, %35 : vector<8x64xf32>
    %cst_14 = arith.constant dense<0.000000e+00> : vector<8x256xf32>
    %38 = tpu.matmul %36, %7, %cst_14 {dimension_numbers = #tpu.dot_dimension_numbers<[1], [0], [0], [1], [0, 0, 1, 1], [], []>} : vector<8x64xf32>, vector<64x256xf32>, vector<8x256xf32> -> vector<8x256xf32>
    %c8 = arith.constant 8 : index
    %c0_15 = arith.constant 0 : index
    %39 = vector.load %arg7[%c8, %c0_15] : memref<72x256xf32, #tpu.memory_space<vmem>>, vector<8x256xf32>
    %40 = arith.addf %38, %39 : vector<8x256xf32>
    %41 = vector.extract_strided_slice %40 {offsets = [0, 0], sizes = [8, 128], strides = [1, 1]} : vector<8x256xf32> to vector<8x128xf32>
    %42 = arith.negf %41 : vector<8x128xf32>
    %43 = math.exp %42 : vector<8x128xf32>
    %cst_16 = arith.constant 1.000000e+00 : f32
    %44 = vector.broadcast %cst_16 : f32 to vector<8x128xf32>
    %45 = arith.addf %44, %43 : vector<8x128xf32>
    %46 = arith.divf %44, %45 : vector<8x128xf32>
    %47 = vector.extract_strided_slice %40 {offsets = [0, 128], sizes = [8, 64], strides = [1, 1]} : vector<8x256xf32> to vector<8x64xf32>
    %48 = math.tanh %47 : vector<8x64xf32>
    %49 = vector.extract_strided_slice %40 {offsets = [0, 192], sizes = [8, 64], strides = [1, 1]} : vector<8x256xf32> to vector<8x64xf32>
    %50 = arith.negf %49 : vector<8x64xf32>
    %51 = math.exp %50 : vector<8x64xf32>
    %cst_17 = arith.constant 1.000000e+00 : f32
    %52 = vector.broadcast %cst_17 : f32 to vector<8x64xf32>
    %53 = arith.addf %52, %51 : vector<8x64xf32>
    %54 = arith.divf %52, %53 : vector<8x64xf32>
    %55 = vector.extract_strided_slice %46 {offsets = [0, 0], sizes = [8, 64], strides = [1, 1]} : vector<8x128xf32> to vector<8x64xf32>
    %56 = vector.extract_strided_slice %46 {offsets = [0, 64], sizes = [8, 64], strides = [1, 1]} : vector<8x128xf32> to vector<8x64xf32>
    %57 = arith.mulf %56, %37 : vector<8x64xf32>
    %58 = arith.mulf %55, %48 : vector<8x64xf32>
    %59 = arith.addf %57, %58 : vector<8x64xf32>
    %60 = math.tanh %59 : vector<8x64xf32>
    %61 = arith.mulf %54, %60 : vector<8x64xf32>
    %cst_18 = arith.constant dense<0.000000e+00> : vector<8x256xf32>
    %62 = tpu.matmul %61, %7, %cst_18 {dimension_numbers = #tpu.dot_dimension_numbers<[1], [0], [0], [1], [0, 0, 1, 1], [], []>} : vector<8x64xf32>, vector<64x256xf32>, vector<8x256xf32> -> vector<8x256xf32>
    %c16 = arith.constant 16 : index
    %c0_19 = arith.constant 0 : index
    %63 = vector.load %arg7[%c16, %c0_19] : memref<72x256xf32, #tpu.memory_space<vmem>>, vector<8x256xf32>
    %64 = arith.addf %62, %63 : vector<8x256xf32>
    %65 = vector.extract_strided_slice %64 {offsets = [0, 0], sizes = [8, 128], strides = [1, 1]} : vector<8x256xf32> to vector<8x128xf32>
    %66 = arith.negf %65 : vector<8x128xf32>
    %67 = math.exp %66 : vector<8x128xf32>
    %cst_20 = arith.constant 1.000000e+00 : f32
    %68 = vector.broadcast %cst_20 : f32 to vector<8x128xf32>
    %69 = arith.addf %68, %67 : vector<8x128xf32>
    %70 = arith.divf %68, %69 : vector<8x128xf32>
    %71 = vector.extract_strided_slice %64 {offsets = [0, 128], sizes = [8, 64], strides = [1, 1]} : vector<8x256xf32> to vector<8x64xf32>
    %72 = math.tanh %71 : vector<8x64xf32>
    %73 = vector.extract_strided_slice %64 {offsets = [0, 192], sizes = [8, 64], strides = [1, 1]} : vector<8x256xf32> to vector<8x64xf32>
    %74 = arith.negf %73 : vector<8x64xf32>
    %75 = math.exp %74 : vector<8x64xf32>
    %cst_21 = arith.constant 1.000000e+00 : f32
    %76 = vector.broadcast %cst_21 : f32 to vector<8x64xf32>
    %77 = arith.addf %76, %75 : vector<8x64xf32>
    %78 = arith.divf %76, %77 : vector<8x64xf32>
    %79 = vector.extract_strided_slice %70 {offsets = [0, 0], sizes = [8, 64], strides = [1, 1]} : vector<8x128xf32> to vector<8x64xf32>
    %80 = vector.extract_strided_slice %70 {offsets = [0, 64], sizes = [8, 64], strides = [1, 1]} : vector<8x128xf32> to vector<8x64xf32>
    %81 = arith.mulf %80, %59 : vector<8x64xf32>
    %82 = arith.mulf %79, %72 : vector<8x64xf32>
    %83 = arith.addf %81, %82 : vector<8x64xf32>
    %84 = math.tanh %83 : vector<8x64xf32>
    %85 = arith.mulf %78, %84 : vector<8x64xf32>
    %cst_22 = arith.constant dense<0.000000e+00> : vector<8x256xf32>
    %86 = tpu.matmul %85, %7, %cst_22 {dimension_numbers = #tpu.dot_dimension_numbers<[1], [0], [0], [1], [0, 0, 1, 1], [], []>} : vector<8x64xf32>, vector<64x256xf32>, vector<8x256xf32> -> vector<8x256xf32>
    %c24 = arith.constant 24 : index
    %c0_23 = arith.constant 0 : index
    %87 = vector.load %arg7[%c24, %c0_23] : memref<72x256xf32, #tpu.memory_space<vmem>>, vector<8x256xf32>
    %88 = arith.addf %86, %87 : vector<8x256xf32>
    %89 = vector.extract_strided_slice %88 {offsets = [0, 0], sizes = [8, 128], strides = [1, 1]} : vector<8x256xf32> to vector<8x128xf32>
    %90 = arith.negf %89 : vector<8x128xf32>
    %91 = math.exp %90 : vector<8x128xf32>
    %cst_24 = arith.constant 1.000000e+00 : f32
    %92 = vector.broadcast %cst_24 : f32 to vector<8x128xf32>
    %93 = arith.addf %92, %91 : vector<8x128xf32>
    %94 = arith.divf %92, %93 : vector<8x128xf32>
    %95 = vector.extract_strided_slice %88 {offsets = [0, 128], sizes = [8, 64], strides = [1, 1]} : vector<8x256xf32> to vector<8x64xf32>
    %96 = math.tanh %95 : vector<8x64xf32>
    %97 = vector.extract_strided_slice %88 {offsets = [0, 192], sizes = [8, 64], strides = [1, 1]} : vector<8x256xf32> to vector<8x64xf32>
    %98 = arith.negf %97 : vector<8x64xf32>
    %99 = math.exp %98 : vector<8x64xf32>
    %cst_25 = arith.constant 1.000000e+00 : f32
    %100 = vector.broadcast %cst_25 : f32 to vector<8x64xf32>
    %101 = arith.addf %100, %99 : vector<8x64xf32>
    %102 = arith.divf %100, %101 : vector<8x64xf32>
    %103 = vector.extract_strided_slice %94 {offsets = [0, 0], sizes = [8, 64], strides = [1, 1]} : vector<8x128xf32> to vector<8x64xf32>
    %104 = vector.extract_strided_slice %94 {offsets = [0, 64], sizes = [8, 64], strides = [1, 1]} : vector<8x128xf32> to vector<8x64xf32>
    %105 = arith.mulf %104, %83 : vector<8x64xf32>
    %106 = arith.mulf %103, %96 : vector<8x64xf32>
    %107 = arith.addf %105, %106 : vector<8x64xf32>
    %108 = math.tanh %107 : vector<8x64xf32>
    %109 = arith.mulf %102, %108 : vector<8x64xf32>
    %cst_26 = arith.constant dense<0.000000e+00> : vector<8x256xf32>
    %110 = tpu.matmul %109, %7, %cst_26 {dimension_numbers = #tpu.dot_dimension_numbers<[1], [0], [0], [1], [0, 0, 1, 1], [], []>} : vector<8x64xf32>, vector<64x256xf32>, vector<8x256xf32> -> vector<8x256xf32>
    %c32 = arith.constant 32 : index
    %c0_27 = arith.constant 0 : index
    %111 = vector.load %arg7[%c32, %c0_27] : memref<72x256xf32, #tpu.memory_space<vmem>>, vector<8x256xf32>
    %112 = arith.addf %110, %111 : vector<8x256xf32>
    %113 = vector.extract_strided_slice %112 {offsets = [0, 0], sizes = [8, 128], strides = [1, 1]} : vector<8x256xf32> to vector<8x128xf32>
    %114 = arith.negf %113 : vector<8x128xf32>
    %115 = math.exp %114 : vector<8x128xf32>
    %cst_28 = arith.constant 1.000000e+00 : f32
    %116 = vector.broadcast %cst_28 : f32 to vector<8x128xf32>
    %117 = arith.addf %116, %115 : vector<8x128xf32>
    %118 = arith.divf %116, %117 : vector<8x128xf32>
    %119 = vector.extract_strided_slice %112 {offsets = [0, 128], sizes = [8, 64], strides = [1, 1]} : vector<8x256xf32> to vector<8x64xf32>
    %120 = math.tanh %119 : vector<8x64xf32>
    %121 = vector.extract_strided_slice %112 {offsets = [0, 192], sizes = [8, 64], strides = [1, 1]} : vector<8x256xf32> to vector<8x64xf32>
    %122 = arith.negf %121 : vector<8x64xf32>
    %123 = math.exp %122 : vector<8x64xf32>
    %cst_29 = arith.constant 1.000000e+00 : f32
    %124 = vector.broadcast %cst_29 : f32 to vector<8x64xf32>
    %125 = arith.addf %124, %123 : vector<8x64xf32>
    %126 = arith.divf %124, %125 : vector<8x64xf32>
    %127 = vector.extract_strided_slice %118 {offsets = [0, 0], sizes = [8, 64], strides = [1, 1]} : vector<8x128xf32> to vector<8x64xf32>
    %128 = vector.extract_strided_slice %118 {offsets = [0, 64], sizes = [8, 64], strides = [1, 1]} : vector<8x128xf32> to vector<8x64xf32>
    %129 = arith.mulf %128, %107 : vector<8x64xf32>
    %130 = arith.mulf %127, %120 : vector<8x64xf32>
    %131 = arith.addf %129, %130 : vector<8x64xf32>
    %132 = math.tanh %131 : vector<8x64xf32>
    %133 = arith.mulf %126, %132 : vector<8x64xf32>
    %cst_30 = arith.constant dense<0.000000e+00> : vector<8x256xf32>
    %134 = tpu.matmul %133, %7, %cst_30 {dimension_numbers = #tpu.dot_dimension_numbers<[1], [0], [0], [1], [0, 0, 1, 1], [], []>} : vector<8x64xf32>, vector<64x256xf32>, vector<8x256xf32> -> vector<8x256xf32>
    %c40 = arith.constant 40 : index
    %c0_31 = arith.constant 0 : index
    %135 = vector.load %arg7[%c40, %c0_31] : memref<72x256xf32, #tpu.memory_space<vmem>>, vector<8x256xf32>
    %136 = arith.addf %134, %135 : vector<8x256xf32>
    %137 = vector.extract_strided_slice %136 {offsets = [0, 0], sizes = [8, 128], strides = [1, 1]} : vector<8x256xf32> to vector<8x128xf32>
    %138 = arith.negf %137 : vector<8x128xf32>
    %139 = math.exp %138 : vector<8x128xf32>
    %cst_32 = arith.constant 1.000000e+00 : f32
    %140 = vector.broadcast %cst_32 : f32 to vector<8x128xf32>
    %141 = arith.addf %140, %139 : vector<8x128xf32>
    %142 = arith.divf %140, %141 : vector<8x128xf32>
    %143 = vector.extract_strided_slice %136 {offsets = [0, 128], sizes = [8, 64], strides = [1, 1]} : vector<8x256xf32> to vector<8x64xf32>
    %144 = math.tanh %143 : vector<8x64xf32>
    %145 = vector.extract_strided_slice %136 {offsets = [0, 192], sizes = [8, 64], strides = [1, 1]} : vector<8x256xf32> to vector<8x64xf32>
    %146 = arith.negf %145 : vector<8x64xf32>
    %147 = math.exp %146 : vector<8x64xf32>
    %cst_33 = arith.constant 1.000000e+00 : f32
    %148 = vector.broadcast %cst_33 : f32 to vector<8x64xf32>
    %149 = arith.addf %148, %147 : vector<8x64xf32>
    %150 = arith.divf %148, %149 : vector<8x64xf32>
    %151 = vector.extract_strided_slice %142 {offsets = [0, 0], sizes = [8, 64], strides = [1, 1]} : vector<8x128xf32> to vector<8x64xf32>
    %152 = vector.extract_strided_slice %142 {offsets = [0, 64], sizes = [8, 64], strides = [1, 1]} : vector<8x128xf32> to vector<8x64xf32>
    %153 = arith.mulf %152, %131 : vector<8x64xf32>
    %154 = arith.mulf %151, %144 : vector<8x64xf32>
    %155 = arith.addf %153, %154 : vector<8x64xf32>
    %156 = math.tanh %155 : vector<8x64xf32>
    %157 = arith.mulf %150, %156 : vector<8x64xf32>
    %cst_34 = arith.constant dense<0.000000e+00> : vector<8x256xf32>
    %158 = tpu.matmul %157, %7, %cst_34 {dimension_numbers = #tpu.dot_dimension_numbers<[1], [0], [0], [1], [0, 0, 1, 1], [], []>} : vector<8x64xf32>, vector<64x256xf32>, vector<8x256xf32> -> vector<8x256xf32>
    %c48 = arith.constant 48 : index
    %c0_35 = arith.constant 0 : index
    %159 = vector.load %arg7[%c48, %c0_35] : memref<72x256xf32, #tpu.memory_space<vmem>>, vector<8x256xf32>
    %160 = arith.addf %158, %159 : vector<8x256xf32>
    %161 = vector.extract_strided_slice %160 {offsets = [0, 0], sizes = [8, 128], strides = [1, 1]} : vector<8x256xf32> to vector<8x128xf32>
    %162 = arith.negf %161 : vector<8x128xf32>
    %163 = math.exp %162 : vector<8x128xf32>
    %cst_36 = arith.constant 1.000000e+00 : f32
    %164 = vector.broadcast %cst_36 : f32 to vector<8x128xf32>
    %165 = arith.addf %164, %163 : vector<8x128xf32>
    %166 = arith.divf %164, %165 : vector<8x128xf32>
    %167 = vector.extract_strided_slice %160 {offsets = [0, 128], sizes = [8, 64], strides = [1, 1]} : vector<8x256xf32> to vector<8x64xf32>
    %168 = math.tanh %167 : vector<8x64xf32>
    %169 = vector.extract_strided_slice %160 {offsets = [0, 192], sizes = [8, 64], strides = [1, 1]} : vector<8x256xf32> to vector<8x64xf32>
    %170 = arith.negf %169 : vector<8x64xf32>
    %171 = math.exp %170 : vector<8x64xf32>
    %cst_37 = arith.constant 1.000000e+00 : f32
    %172 = vector.broadcast %cst_37 : f32 to vector<8x64xf32>
    %173 = arith.addf %172, %171 : vector<8x64xf32>
    %174 = arith.divf %172, %173 : vector<8x64xf32>
    %175 = vector.extract_strided_slice %166 {offsets = [0, 0], sizes = [8, 64], strides = [1, 1]} : vector<8x128xf32> to vector<8x64xf32>
    %176 = vector.extract_strided_slice %166 {offsets = [0, 64], sizes = [8, 64], strides = [1, 1]} : vector<8x128xf32> to vector<8x64xf32>
    %177 = arith.mulf %176, %155 : vector<8x64xf32>
    %178 = arith.mulf %175, %168 : vector<8x64xf32>
    %179 = arith.addf %177, %178 : vector<8x64xf32>
    %180 = math.tanh %179 : vector<8x64xf32>
    %181 = arith.mulf %174, %180 : vector<8x64xf32>
    %cst_38 = arith.constant dense<0.000000e+00> : vector<8x256xf32>
    %182 = tpu.matmul %181, %7, %cst_38 {dimension_numbers = #tpu.dot_dimension_numbers<[1], [0], [0], [1], [0, 0, 1, 1], [], []>} : vector<8x64xf32>, vector<64x256xf32>, vector<8x256xf32> -> vector<8x256xf32>
    %c56 = arith.constant 56 : index
    %c0_39 = arith.constant 0 : index
    %183 = vector.load %arg7[%c56, %c0_39] : memref<72x256xf32, #tpu.memory_space<vmem>>, vector<8x256xf32>
    %184 = arith.addf %182, %183 : vector<8x256xf32>
    %185 = vector.extract_strided_slice %184 {offsets = [0, 0], sizes = [8, 128], strides = [1, 1]} : vector<8x256xf32> to vector<8x128xf32>
    %186 = arith.negf %185 : vector<8x128xf32>
    %187 = math.exp %186 : vector<8x128xf32>
    %cst_40 = arith.constant 1.000000e+00 : f32
    %188 = vector.broadcast %cst_40 : f32 to vector<8x128xf32>
    %189 = arith.addf %188, %187 : vector<8x128xf32>
    %190 = arith.divf %188, %189 : vector<8x128xf32>
    %191 = vector.extract_strided_slice %184 {offsets = [0, 128], sizes = [8, 64], strides = [1, 1]} : vector<8x256xf32> to vector<8x64xf32>
    %192 = math.tanh %191 : vector<8x64xf32>
    %193 = vector.extract_strided_slice %184 {offsets = [0, 192], sizes = [8, 64], strides = [1, 1]} : vector<8x256xf32> to vector<8x64xf32>
    %194 = arith.negf %193 : vector<8x64xf32>
    %195 = math.exp %194 : vector<8x64xf32>
    %cst_41 = arith.constant 1.000000e+00 : f32
    %196 = vector.broadcast %cst_41 : f32 to vector<8x64xf32>
    %197 = arith.addf %196, %195 : vector<8x64xf32>
    %198 = arith.divf %196, %197 : vector<8x64xf32>
    %199 = vector.extract_strided_slice %190 {offsets = [0, 0], sizes = [8, 64], strides = [1, 1]} : vector<8x128xf32> to vector<8x64xf32>
    %200 = vector.extract_strided_slice %190 {offsets = [0, 64], sizes = [8, 64], strides = [1, 1]} : vector<8x128xf32> to vector<8x64xf32>
    %201 = arith.mulf %200, %179 : vector<8x64xf32>
    %202 = arith.mulf %199, %192 : vector<8x64xf32>
    %203 = arith.addf %201, %202 : vector<8x64xf32>
    %204 = math.tanh %203 : vector<8x64xf32>
    %205 = arith.mulf %198, %204 : vector<8x64xf32>
    %cst_42 = arith.constant dense<0.000000e+00> : vector<8x256xf32>
    %206 = tpu.matmul %205, %7, %cst_42 {dimension_numbers = #tpu.dot_dimension_numbers<[1], [0], [0], [1], [0, 0, 1, 1], [], []>} : vector<8x64xf32>, vector<64x256xf32>, vector<8x256xf32> -> vector<8x256xf32>
    %c64 = arith.constant 64 : index
    %c0_43 = arith.constant 0 : index
    %207 = vector.load %arg7[%c64, %c0_43] : memref<72x256xf32, #tpu.memory_space<vmem>>, vector<8x256xf32>
    %208 = arith.addf %206, %207 : vector<8x256xf32>
    %209 = vector.extract_strided_slice %208 {offsets = [0, 0], sizes = [8, 128], strides = [1, 1]} : vector<8x256xf32> to vector<8x128xf32>
    %210 = arith.negf %209 : vector<8x128xf32>
    %211 = math.exp %210 : vector<8x128xf32>
    %cst_44 = arith.constant 1.000000e+00 : f32
    %212 = vector.broadcast %cst_44 : f32 to vector<8x128xf32>
    %213 = arith.addf %212, %211 : vector<8x128xf32>
    %214 = arith.divf %212, %213 : vector<8x128xf32>
    %215 = vector.extract_strided_slice %208 {offsets = [0, 128], sizes = [8, 64], strides = [1, 1]} : vector<8x256xf32> to vector<8x64xf32>
    %216 = math.tanh %215 : vector<8x64xf32>
    %217 = vector.extract_strided_slice %208 {offsets = [0, 192], sizes = [8, 64], strides = [1, 1]} : vector<8x256xf32> to vector<8x64xf32>
    %218 = arith.negf %217 : vector<8x64xf32>
    %219 = math.exp %218 : vector<8x64xf32>
    %cst_45 = arith.constant 1.000000e+00 : f32
    %220 = vector.broadcast %cst_45 : f32 to vector<8x64xf32>
    %221 = arith.addf %220, %219 : vector<8x64xf32>
    %222 = arith.divf %220, %221 : vector<8x64xf32>
    %223 = vector.extract_strided_slice %214 {offsets = [0, 0], sizes = [8, 64], strides = [1, 1]} : vector<8x128xf32> to vector<8x64xf32>
    %224 = vector.extract_strided_slice %214 {offsets = [0, 64], sizes = [8, 64], strides = [1, 1]} : vector<8x128xf32> to vector<8x64xf32>
    %225 = arith.mulf %224, %203 : vector<8x64xf32>
    %226 = arith.mulf %223, %216 : vector<8x64xf32>
    %227 = arith.addf %225, %226 : vector<8x64xf32>
    %228 = math.tanh %227 : vector<8x64xf32>
    %229 = arith.mulf %222, %228 : vector<8x64xf32>
    %230 = vector.extract_strided_slice %229 {offsets = [0, 32], sizes = [8, 32], strides = [1, 1]} : vector<8x64xf32> to vector<8x32xf32>
    %c0_46 = arith.constant 0 : index
    %c0_47 = arith.constant 0 : index
    %231 = vector.load %arg4[%c0_46, %c0_47] : memref<1x32xf32, #tpu.memory_space<vmem>>, vector<1x32xf32>
    %232 = vector.broadcast %231 : vector<1x32xf32> to vector<8x32xf32>
    %233 = arith.mulf %230, %232 : vector<8x32xf32>
    %cst_48 = arith.constant dense<0.000000e+00> : vector<8xf32>
    %234 = vector.multi_reduction <add>, %233, %cst_48 [1] : vector<8x32xf32> to vector<8xf32>
    %235 = vector.shape_cast %234 : vector<8xf32> to vector<8x1xf32>
    %c0_49 = arith.constant 0 : index
    %c0_50 = arith.constant 0 : index
    %236 = vector.load %arg5[%c0_49, %c0_50] : memref<1x1xf32, #tpu.memory_space<vmem>>, vector<1x1xf32>
    %237 = vector.broadcast %236 : vector<1x1xf32> to vector<8x1xf32>
    %238 = arith.addf %235, %237 : vector<8x1xf32>
    %c0_51 = arith.constant 0 : index
    %c0_52 = arith.constant 0 : index
    %239 = vector.load %arg6[%c0_51, %c0_52] : memref<8x1xf32, #tpu.memory_space<vmem>>, vector<8x1xf32>
    tpu.vector_store %arg6[%c0_51, %c0_52], %238 {strides = array<i32>} : memref<8x1xf32, #tpu.memory_space<vmem>>, vector<8x1xf32>,
    return
  }
}

</mosaic_0001>

<bundles_post_ra>
// kernel: tpu_custom_call.1
= control target key start
LH: loop header
LB: loop body
LE: loop exit
PB: predicated region body
PF: predicated region fallthrough
CT: control target
= control target key end

     0   :  { %s1741_s0 = inlined_call_operand.vmem [shape: f32[72,8], index: 0, kind: input, shape index: {}]   ;;  %s1742_s1 = inlined_call_operand.vmem [shape: f32[8,256], index: 1, kind: input, shape index: {}]   ;;  %s1743_s2 = inlined_call_operand.vmem [shape: f32[1,256], index: 2, kind: input, shape index: {}]   ;;  %s1744_s3 = inlined_call_operand.hbm [shape: f32[64,256], index: 3, kind: input, shape index: {}]   ;;  %s1745_s4 = inlined_call_operand.vmem [shape: f32[1,32], index: 4, kind: input, shape index: {}]   ;;  %s1746_s5 = inlined_call_operand.<no memory space> [shape: f32[1,1], index: 5, kind: input, shape index: {}]   ;;  %s1747_s6 = inlined_call_operand.vmem [shape: f32[8,1], index: 6, kind: output, shape index: {}]  }
   0x1   :  { %v11_v0 = vstv %s1746_s5 }
   0x2   :  { %12 = vst [vmem:[#allocation3] sm:$0x1] %v11_v0 }
   0x3   :  { %13 = vsyncpa [#allocation5], 0  ;;  %s1449_s23 = smov [#allocation4]   ;;  %s1425_s27 = scalar_lea.hbm %s1744_s3, 2048 }
   0x4   :  { %s25_s24 = sshll.u32 %s1449_s23, 4  ;;  %p1426_p0 = scmp.ne.s32.totalorder %s1744_s3, %s1425_s27  ;;  %s26_s24 = int_to_ptr.vmem [resolvable:$true] %s25_s24 }
   0x5   :  { %p1429_p1 = scmp.lt.u32.totalorder %s1425_s27, %s1744_s3 }
   0x7   :  { %p1431_p2 = pnand %p1429_p1, %p1426_p0 }
   0x9   :  { %1434 = shalt.err (!%p1431_p2)
}
   0xa   :  { %s1435_s5 = scalar_lea.vmem %s26_s24, 2048  ;;  %p1440_p4 = scmp.lt.s32.totalorder %s26_s24, %s26_s24 }
   0xb   :  { %p1436_p3 = scmp.ne.s32.totalorder %s26_s24, %s1435_s5  ;;  %p1441_p5 = scmp.lt.s32.totalorder %s1435_s5, %s1435_s5 }
   0xd   :  { %p1442_p6 = por %p1441_p5, %p1440_p4 }
   0xf   :  { %p1443_p7 = pnand %p1442_p6, %p1436_p3 }
  0x11   :  { %1446 = shalt.err (!%p1443_p7)
}
  0x12   :  { %s1450_s8 = smov 256   ;;  %s1451_s9 = smov 16  }
  0x13   :  { %31 = dma.hbm_to_vmem [thread:$0]  %s1744_s3, 2048, %s26_s24, [#allocation5], %s1450_s8, %s1450_s8, %s1451_s9  }
  0x14   :  { %1447 = dma.done.wait [#allocation5], 2048  }
  0x15   :  { %1448 = vsyncadd [#allocation5], 4294965248  ;;  %v1452_v1 = vmov 0.0   ;;  %v49_v2 = vld [vmem:[%s1742_s1 + $0x8] sm:$0xff]  ;;  %v48_v3 = vld [vmem:[%s1742_s1] sm:$0xff]  ;;  %vm62_vm0 = vcmask 64512   ;;  %v52_v5 = vlaneseq }
  0x16   :  { %154 = vmatprep.mubr.f32.mxu1 %v1452_v1  ;;  %650 = vmatprep.mubr.f32.mxu0 %v1452_v1  ;;  %v39_v4 = vld [vmem:[%s1741_s0] sm:$0xff]  ;;  %s1453_s1 = smov 64   ;;  %v228_v24 = vld [vmem:[#allocation4 + $0x8] sm:$0xff]  ;;  %v229_v28 = vld [vmem:[#allocation4 + $0x10] sm:$0xff]  ;;  %vm283_vm2 = vcmask 523264   ;;  %s1454_s10 = smov 96  }
  0x17   :  { %90 = vmatprep.subr.mxu1 %v49_v2  ;;  %v53_v6 = vshrl.u32 %v52_v5, 7  ;;  %v50_v8 = vld [vmem:[%s1743_s2] sm:$0x3]  ;;  %v268_v19 = vand.u32 127, %v52_v5  ;;  %v40_v29 = vld [vmem:[%s1741_s0 + $0x8] sm:$0xff]  ;;  %v41_v34 = vld [vmem:[%s1741_s0 + $0x10] sm:$0xff] }
  0x18   :  { %91 = vmatpush1.msra.mxu1 %v48_v3  ;;  %v230_v25 = vld [vmem:[#allocation4 + $0x18] sm:$0xff]  ;;  %v227_v26 = vld [vmem:[#allocation4] sm:$0xff]  ;;  %v232_v31 = vld [vmem:[#allocation4 + $0x28] sm:$0xff]  ;;  %vm1093_vm3 = vcmask 261120   ;;  %vm1105_vm4 = vcmask 7168  }
  0x19   :  { %1112 = vmatmul.mubr.msk.f32.vlgmr.msra.gmra.mrb[0].mxu1 %vm62_vm0, %v39_v4  ;;  %v54_v7 = vsub.s32 0, %v53_v6  ;;  %v58_v14 = vsub.s32 1, %v53_v6  ;;  %vm269_vm1 = vcmp.lt.s32.totalorder %v268_v19, 32  ;;  %v1537_v27 = vpack.c.bf16 %v230_v25, %v228_v24  ;;  %v234_v32 = vld [vmem:[#allocation4 + $0x38] sm:$0xff]  ;;  %v231_v33 = vld [vmem:[#allocation4 + $0x20] sm:$0xff]  ;;  %v233_v36 = vld [vmem:[#allocation4 + $0x30] sm:$0xff] }
  0x1a   :  { %160 = vmatprep.mubr.f32.mxu1 %v1452_v1  ;;  %v1123_v23 = vsel %vm269_vm1, 1.0, %v1452_v1  ;;  %v1542_v30 = vpack.c.bf16 %v229_v28, %v227_v26  ;;  %v1550_v35 = vpack.c.bf16 %v234_v32, %v232_v31  ;;  %v1553_v37 = vpack.c.bf16 %v233_v36, %v231_v33  ;;  %v236_v38 = vld [vmem:[#allocation4 + $0x48] sm:$0xff]  ;;  %v238_v39 = vld [vmem:[#allocation4 + $0x58] sm:$0xff]  ;;  %v235_v41 = vld [vmem:[#allocation4 + $0x40] sm:$0xff] }
  0x1b   :  { %v1522_v9 = vrot.slane %v50_v8, %v54_v7  ;;  %v1525_v15 = vrot.slane %v50_v8, %v58_v14  ;;  %1151 = vmatprep.subr.bf16.mxu1 %v1537_v27  ;;  %1199 = vmatprep.subr.bf16.mxu0 %v1537_v27  ;;  %v1557_v40 = vpack.c.bf16 %v238_v39, %v236_v38  ;;  %v237_v42 = vld [vmem:[#allocation4 + $0x50] sm:$0xff]  ;;  %v240_v43 = vld [vmem:[#allocation4 + $0x68] sm:$0xff]  ;;  %v242_v44 = vld [vmem:[#allocation4 + $0x78] sm:$0xff] }
  0x1c   :  { %1153 = vmatpush1.bf16.msra.mxu1 %v1542_v30  ;;  %1201 = vmatpush1.bf16.msra.mxu0 %v1542_v30  ;;  %v42_v45 = vld [vmem:[%s1741_s0 + $0x18] sm:$0xff]  ;;  %v1567_v46 = vpack.c.bf16 %v237_v42, %v235_v41  ;;  %v1570_v47 = vpack.c.bf16 %v242_v44, %v240_v43  ;;  %v239_v48 = vld [vmem:[#allocation4 + $0x60] sm:$0xff]  ;;  %v45_v53 = vld [vmem:[%s1741_s0 + $0x30] sm:$0xff] }
  0x1d   :  { %1113 = vmatmul.mubr.msk.f32.gmra.mrb[2].mxu1 %vm62_vm0, %v40_v29  ;;  %1155 = vmatprep.subr.bf16.mxu1 %v1550_v35  ;;  %v241_v49 = vld [vmem:[#allocation4 + $0x70] sm:$0xff]  ;;  %v43_v50 = vld [vmem:[%s1741_s0 + $0x20] sm:$0xff]  ;;  %v44_v52 = vld [vmem:[%s1741_s0 + $0x28] sm:$0xff] }
  0x1e   :  { %166 = vmatprep.mubr.f32.mxu1 %v1452_v1  ;;  %1203 = vmatprep.subr.bf16.mxu0 %v1550_v35  ;;  %v1580_v51 = vpack.c.bf16 %v241_v49, %v239_v48  ;;  %v46_v54 = vld [vmem:[%s1741_s0 + $0x38] sm:$0xff]  ;;  %v47_v55 = vld [vmem:[%s1741_s0 + $0x40] sm:$0xff] }
  0x20   :  { %1157 = vmatpush1.bf16.msra.mxu1 %v1553_v37  ;;  %1205 = vmatpush1.bf16.msra.mxu0 %v1553_v37 }
  0x21   :  { %1114 = vmatmul.mubr.msk.f32.gmra.mrb[4].mxu1 %vm62_vm0, %v41_v34  ;;  %1159 = vmatprep.subr.bf16.mxu1 %v1557_v40 }
  0x22   :  { %172 = vmatprep.mubr.f32.mxu1 %v1452_v1  ;;  %1207 = vmatprep.subr.bf16.mxu0 %v1557_v40 }
  0x24   :  { %1161 = vmatpush1.bf16.msra.mxu1 %v1567_v46  ;;  %1209 = vmatpush1.bf16.msra.mxu0 %v1567_v46 }
  0x25   :  { %1115 = vmatmul.mubr.msk.f32.gmra.mrb[6].mxu1 %vm62_vm0, %v42_v45  ;;  %1163 = vmatprep.subr.bf16.mxu1 %v1570_v47 }
  0x26   :  { %178 = vmatprep.mubr.f32.mxu1 %v1452_v1  ;;  %1211 = vmatprep.subr.bf16.mxu0 %v1570_v47 }
  0x28   :  { %1165 = vmatpush1.bf16.msra.mxu1 %v1580_v51  ;;  %1213 = vmatpush1.bf16.msra.mxu0 %v1580_v51 }
  0x29   :  { %1116 = vmatmul.mubr.msk.f32.gmra.mrb[8].mxu1 %vm62_vm0, %v43_v50  ;;  %1167 = vmatprep.subr.bf16.mxu1 %v1537_v27 }
  0x2a   :  { %184 = vmatprep.mubr.f32.mxu1 %v1452_v1  ;;  %1215 = vmatprep.subr.bf16.mxu0 %v1537_v27 }
  0x2d   :  { %1117 = vmatmul.mubr.msk.f32.gmra.mrb[10].mxu1 %vm62_vm0, %v44_v52 }
  0x2e   :  { %190 = vmatprep.mubr.f32.mxu1 %v1452_v1 }
  0x31   :  { %1118 = vmatmul.mubr.msk.f32.gmra.mrb[12].mxu1 %vm62_vm0, %v45_v53 }
  0x32   :  { %196 = vmatprep.mubr.f32.mxu1 %v1452_v1 }
  0x35   :  { %1119 = vmatmul.mubr.msk.f32.gmra.mrb[14].mxu1 %vm62_vm0, %v46_v54 }
  0x36   :  { %202 = vmatprep.mubr.f32.mxu1 %v1452_v1 }
  0x39   :  { %1120 = vmatmul.mubr.msk.f32.gmra.mrb[16].mxu1 %vm62_vm0, %v47_v55 }
  0x3a   :  { %350 = vmatprep.mubr.f32.mxu1 %v1452_v1 }
  0xec   :  { %v156_v10 = vpop.f32.mrb[0].mxu1 }
  0xed   :  { %v157_v11 = vadd.f32 %v156_v10, %v1522_v9  ;;  %v158_v12 = vpop.f32.mrb[1].mxu1 }
  0xee   :  { %v1528_v16 = vadd.f32 %v158_v12, %v1525_v15 }
  0xef   :  { %v1121_v13 = vmul.f32 -1.442695, %v157_v11 }
  0xf0   :  { %v1122_v56 = vmul.f32 -1.442695, %v1528_v16 }
  0xf1   :  { %1317 = vpow2.f32 %v1121_v13 }
  0xf2   :  { %1319 = vtanh.f32 %v1528_v16 }
  0xfb   :  { %v1318_v17 = vpop.eup %1317 }
  0xfc   :  { %v248_v18 = vadd.f32 1.0, %v1318_v17  ;;  %v1320_v20 = vpop.eup %1319  ;;  %v1614_v4 = vpop.f32.mrb[8].mxu1 }
  0xfd   :  { %v1616_v5 = vpop.f32.mrb[9].mxu1 }
  0xfe   :  { %1321 = vrcp.f32 %v248_v18 }
  0xff   :  { %1323 = vpow2.f32 %v1122_v56 }
 0x100   :  { %v1618_v6 = vpop.f32.mrb[10].mxu1 }
 0x101   :  { %v1620_v7 = vpop.f32.mrb[11].mxu1 }
 0x104   :  { %v1622_v8 = vpop.f32.mrb[12].mxu1 }
 0x105   :  { %v1624_v10 = vpop.f32.mrb[13].mxu1 }
 0x108   :  { %v1531_v21 = vpop.eup %1321  ;;  %v1626_v11 = vpop.f32.mrb[14].mxu1 }
 0x109   :  { %v259_v22 = vmul.f32 %v1531_v21, %v1320_v20  ;;  %v1324_v57 = vpop.eup %1323  ;;  %v258_v59 = vmul.f32 0.0, %v1531_v21  ;;  %v1628_v12 = vpop.f32.mrb[15].mxu1 }
 0x10a   :  { %v255_v58 = vadd.f32 1.0, %v1324_v57 }
 0x10b   :  { %261 = vrot.lane.b32.xlu0 %v259_v22, %s1453_s1 }
 0x10c   :  { %1325 = vrcp.f32 %v255_v58  ;;  %v1630_v13 = vpop.f32.mrb[16].mxu1 }
 0x10d   :  { %v1632_v16 = vpop.f32.mrb[17].mxu1 }
 0x10f   :  { %273 = vrot.lane.b32.xlu0 %v1123_v23, %s1453_s1 }
 0x116   :  { %v1326_v62 = vpop.eup %1325 }
 0x17d   :  { %v262_v60 = vpop.permute.xlu0 %261 }
 0x17e   :  { %v264_v61 = vadd.f32 %v262_v60, %v258_v59 }
 0x180   :  { %1327 = vtanh.f32 %v264_v61 }
 0x181   :  { %v274_v2 = vpop.permute.xlu0 %273 }
 0x182   :  { %v277_v25 = vmul.f32 %v274_v2, %v264_v61 }
 0x18a   :  { %v1328_v63 = vpop.eup %1327 }
 0x18b   :  { %v266_v0 = vmul.f32 %v1328_v63, %v1326_v62 }
 0x18d   :  { %v276_v3 = vmul.f32 %v274_v2, %v266_v0 }
 0x18f   :  { %281 = vrot.lane.b32.xlu1 %v276_v3, %s1453_s1 }
 0x201   :  { %v282_v14 = vpop.permute.xlu1 %281 }
 0x202   :  { %1124 = vmatmul.mubr.msk.f32.vlgmr.msra.gmra.mrb[2].mxu1 %vm283_vm2, %v282_v14 }
 0x203   :  { %1169 = vmatpush1.bf16.msra.mxu1 %v1542_v30  ;;  %450 = vmatprep.mubr.f32.mxu1 %v1452_v1 }
 0x204   :  { %1171 = vmatprep.subr.bf16.mxu1 %v1550_v35 }
 0x207   :  { %1173 = vmatpush1.bf16.msra.mxu1 %v1553_v37 }
 0x208   :  { %1175 = vmatprep.subr.bf16.mxu1 %v1557_v40 }
 0x20b   :  { %1177 = vmatpush1.bf16.msra.mxu1 %v1567_v46 }
 0x20c   :  { %1179 = vmatprep.subr.bf16.mxu1 %v1570_v47 }
 0x20f   :  { %1181 = vmatpush1.bf16.msra.mxu1 %v1580_v51 }
 0x210   :  { %1183 = vmatprep.subr.bf16.mxu1 %v1537_v27 }
 0x2d5   :  { %v352_v17 = vpop.f32.mrb[2].mxu1 }
 0x2d6   :  { %v1278_v18 = vadd.f32 %v352_v17, %v1522_v9  ;;  %v354_v19 = vpop.f32.mrb[3].mxu1 }
 0x2d7   :  { %v1279_v21 = vadd.f32 %v354_v19, %v1525_v15 }
 0x2d8   :  { %v1125_v20 = vmul.f32 -1.442695, %v1278_v18 }
 0x2d9   :  { %v1126_v31 = vmul.f32 -1.442695, %v1279_v21 }
 0x2da   :  { %1329 = vpow2.f32 %v1125_v20 }
 0x2db   :  { %1331 = vtanh.f32 %v1279_v21 }
 0x2e4   :  { %v1330_v22 = vpop.eup %1329 }
 0x2e5   :  { %v360_v23 = vadd.f32 1.0, %v1330_v22  ;;  %v1332_v24 = vpop.eup %1331 }
 0x2e7   :  { %1333 = vrcp.f32 %v360_v23 }
 0x2e8   :  { %1335 = vpow2.f32 %v1126_v31 }
 0x2f1   :  { %v1334_v26 = vpop.eup %1333 }
 0x2f2   :  { %v371_v28 = vmul.f32 %v1334_v26, %v1332_v24  ;;  %v370_v29 = vmul.f32 %v1334_v26, %v277_v25  ;;  %v1336_v32 = vpop.eup %1335 }
 0x2f3   :  { %v367_v33 = vadd.f32 1.0, %v1336_v32 }
 0x2f4   :  { %373 = vrot.lane.b32.xlu1 %v371_v28, %s1453_s1 }
 0x2f5   :  { %1337 = vrcp.f32 %v367_v33 }
 0x2ff   :  { %v1338_v38 = vpop.eup %1337 }
 0x366   :  { %v374_v34 = vpop.permute.xlu1 %373 }
 0x367   :  { %v376_v36 = vadd.f32 %v374_v34, %v370_v29 }
 0x369   :  { %1339 = vtanh.f32 %v376_v36 }
 0x373   :  { %v1340_v39 = vpop.eup %1339 }
 0x374   :  { %v378_v41 = vmul.f32 %v1340_v39, %v1338_v38  ;;  %v181_v39 = vadd.f32 %v1614_v4, %v1522_v9 }
 0x376   :  { %382 = vrot.lane.b32.xlu0 %v378_v41, %s1453_s1  ;;  %v183_v41 = vadd.f32 %v1616_v5, %v1525_v15 }
 0x3e8   :  { %v383_v42 = vpop.permute.xlu0 %382 }
 0x3e9   :  { %1127 = vmatmul.mubr.msk.f32.vlgmr.msra.gmra.mrb[4].mxu1 %vm283_vm2, %v383_v42 }
 0x3ea   :  { %1185 = vmatpush1.bf16.msra.mxu1 %v1542_v30  ;;  %550 = vmatprep.mubr.f32.mxu1 %v1452_v1 }
 0x3eb   :  { %1187 = vmatprep.subr.bf16.mxu1 %v1550_v35 }
 0x3ee   :  { %1189 = vmatpush1.bf16.msra.mxu1 %v1553_v37 }
 0x3ef   :  { %1191 = vmatprep.subr.bf16.mxu1 %v1557_v40 }
 0x3f2   :  { %1193 = vmatpush1.bf16.msra.mxu1 %v1567_v46 }
 0x3f3   :  { %1195 = vmatprep.subr.bf16.mxu1 %v1570_v47 }
 0x3f6   :  { %1197 = vmatpush1.bf16.msra.mxu1 %v1580_v51 }
 0x4bc   :  { %v452_v43 = vpop.f32.mrb[4].mxu1 }
 0x4bd   :  { %v1280_v44 = vadd.f32 %v452_v43, %v1522_v9  ;;  %v454_v45 = vpop.f32.mrb[5].mxu1 }
 0x4be   :  { %v1281_v49 = vadd.f32 %v454_v45, %v1525_v15 }
 0x4bf   :  { %v1128_v48 = vmul.f32 -1.442695, %v1280_v44 }
 0x4c0   :  { %v1129_v56 = vmul.f32 -1.442695, %v1281_v49 }
 0x4c1   :  { %1341 = vpow2.f32 %v1128_v48 }
 0x4c2   :  { %1343 = vtanh.f32 %v1281_v49 }
 0x4cb   :  { %v1342_v50 = vpop.eup %1341 }
 0x4cc   :  { %v460_v52 = vadd.f32 1.0, %v1342_v50  ;;  %v1344_v53 = vpop.eup %1343 }
 0x4ce   :  { %1345 = vrcp.f32 %v460_v52 }
 0x4cf   :  { %1347 = vpow2.f32 %v1129_v56 }
 0x4d8   :  { %v1346_v54 = vpop.eup %1345 }
 0x4d9   :  { %v471_v55 = vmul.f32 %v1346_v54, %v1344_v53  ;;  %v1348_v57 = vpop.eup %1347  ;;  %v470_v59 = vmul.f32 %v1346_v54, %v376_v36 }
 0x4da   :  { %v467_v58 = vadd.f32 1.0, %v1348_v57 }
 0x4db   :  { %473 = vrot.lane.b32.xlu1 %v471_v55, %s1453_s1 }
 0x4dc   :  { %1349 = vrcp.f32 %v467_v58 }
 0x4e6   :  { %v1350_v62 = vpop.eup %1349 }
 0x54d   :  { %v474_v60 = vpop.permute.xlu1 %473 }
 0x54e   :  { %v476_v61 = vadd.f32 %v474_v60, %v470_v59 }
 0x550   :  { %1351 = vtanh.f32 %v476_v61 }
 0x55a   :  { %v1352_v63 = vpop.eup %1351 }
 0x55b   :  { %v478_v0 = vmul.f32 %v1352_v63, %v1350_v62  ;;  %v187_v63 = vadd.f32 %v1618_v6, %v1522_v9 }
 0x55d   :  { %482 = vrot.lane.b32.xlu0 %v478_v0, %s1453_s1  ;;  %v189_v0 = vadd.f32 %v1620_v7, %v1525_v15 }
 0x5cf   :  { %v483_v2 = vpop.permute.xlu0 %482 }
 0x5d0   :  { %1130 = vmatmul.mubr.msk.f32.vlgmr.msra.gmra.mrb[6].mxu1 %vm283_vm2, %v483_v2 }
 0x6a3   :  { %v552_v3 = vpop.f32.mrb[6].mxu1 }
 0x6a4   :  { %v1282_v14 = vadd.f32 %v552_v3, %v1522_v9  ;;  %v554_v17 = vpop.f32.mrb[7].mxu1 }
 0x6a5   :  { %v1283_v19 = vadd.f32 %v554_v17, %v1525_v15 }
 0x6a6   :  { %v1131_v18 = vmul.f32 -1.442695, %v1282_v14 }
 0x6a7   :  { %v1132_v25 = vmul.f32 -1.442695, %v1283_v19 }
 0x6a8   :  { %1353 = vpow2.f32 %v1131_v18 }
 0x6a9   :  { %1355 = vtanh.f32 %v1283_v19 }
 0x6b2   :  { %v1354_v20 = vpop.eup %1353 }
 0x6b3   :  { %v560_v21 = vadd.f32 1.0, %v1354_v20  ;;  %v1356_v22 = vpop.eup %1355 }
 0x6b5   :  { %1357 = vrcp.f32 %v560_v21 }
 0x6b6   :  { %1359 = vpow2.f32 %v1132_v25 }
 0x6bf   :  { %v1358_v23 = vpop.eup %1357 }
 0x6c0   :  { %v571_v24 = vmul.f32 %v1358_v23, %v1356_v22  ;;  %v1360_v26 = vpop.eup %1359  ;;  %v570_v29 = vmul.f32 %v1358_v23, %v476_v61 }
 0x6c1   :  { %v567_v28 = vadd.f32 1.0, %v1360_v26 }
 0x6c2   :  { %573 = vrot.lane.b32.xlu1 %v571_v24, %s1453_s1 }
 0x6c3   :  { %1361 = vrcp.f32 %v567_v28 }
 0x6cd   :  { %v1362_v33 = vpop.eup %1361 }
 0x734   :  { %v574_v31 = vpop.permute.xlu1 %573 }
 0x735   :  { %v576_v32 = vadd.f32 %v574_v31, %v570_v29 }
 0x737   :  { %1363 = vtanh.f32 %v576_v32 }
 0x741   :  { %v1364_v34 = vpop.eup %1363 }
 0x742   :  { %v578_v36 = vmul.f32 %v1364_v34, %v1362_v33  ;;  %v193_v34 = vadd.f32 %v1622_v8, %v1522_v9 }
 0x744   :  { %582 = vrot.lane.b32.xlu0 %v578_v36, %s1453_s1  ;;  %v195_v36 = vadd.f32 %v1624_v10, %v1525_v15 }
 0x7b6   :  { %v583_v38 = vpop.permute.xlu0 %582 }
 0x7b7   :  { %1133 = vmatmul.mubr.msk.f32.vlgmr.msra.gmra.mrb[0].mxu0 %vm283_vm2, %v583_v38 }
 0x7b8   :  { %1217 = vmatpush1.bf16.msra.mxu0 %v1542_v30  ;;  %750 = vmatprep.mubr.f32.mxu0 %v1452_v1 }
 0x7b9   :  { %1219 = vmatprep.subr.bf16.mxu0 %v1550_v35 }
 0x7bc   :  { %1221 = vmatpush1.bf16.msra.mxu0 %v1553_v37 }
 0x7bd   :  { %1223 = vmatprep.subr.bf16.mxu0 %v1557_v40 }
 0x7c0   :  { %1225 = vmatpush1.bf16.msra.mxu0 %v1567_v46 }
 0x7c1   :  { %1227 = vmatprep.subr.bf16.mxu0 %v1570_v47 }
 0x7c4   :  { %1229 = vmatpush1.bf16.msra.mxu0 %v1580_v51 }
 0x7c5   :  { %1231 = vmatprep.subr.bf16.mxu0 %v1537_v27 }
 0x88a   :  { %v652_v42 = vpop.f32.mrb[0].mxu0 }
 0x88b   :  { %v653_v43 = vadd.f32 %v652_v42, %v181_v39  ;;  %v654_v44 = vpop.f32.mrb[1].mxu0 }
 0x88c   :  { %v655_v45 = vadd.f32 %v654_v44, %v183_v41 }
 0x88d   :  { %v1134_v48 = vmul.f32 -1.442695, %v653_v43 }
 0x88e   :  { %v1135_v55 = vmul.f32 -1.442695, %v655_v45 }
 0x88f   :  { %1365 = vpow2.f32 %v1134_v48 }
 0x890   :  { %1367 = vtanh.f32 %v655_v45 }
 0x899   :  { %v1366_v49 = vpop.eup %1365 }
 0x89a   :  { %v660_v50 = vadd.f32 1.0, %v1366_v49  ;;  %v1368_v52 = vpop.eup %1367 }
 0x89c   :  { %1369 = vrcp.f32 %v660_v50 }
 0x89d   :  { %1371 = vpow2.f32 %v1135_v55 }
 0x8a6   :  { %v1370_v53 = vpop.eup %1369 }
 0x8a7   :  { %v671_v54 = vmul.f32 %v1370_v53, %v1368_v52  ;;  %v1372_v4 = vpop.eup %1371  ;;  %v670_v5 = vmul.f32 %v1370_v53, %v576_v32 }
 0x8a8   :  { %v667_v56 = vadd.f32 1.0, %v1372_v4 }
 0x8a9   :  { %673 = vrot.lane.b32.xlu1 %v671_v54, %s1453_s1 }
 0x8aa   :  { %1373 = vrcp.f32 %v667_v56 }
 0x8b4   :  { %v1374_v59 = vpop.eup %1373 }
 0x91b   :  { %v674_v57 = vpop.permute.xlu1 %673 }
 0x91c   :  { %v676_v58 = vadd.f32 %v674_v57, %v670_v5  ;;  %v199_v57 = vadd.f32 %v1626_v11, %v1522_v9 }
 0x91e   :  { %1375 = vtanh.f32 %v676_v58 }
 0x928   :  { %v1376_v60 = vpop.eup %1375 }
 0x929   :  { %v678_v61 = vmul.f32 %v1376_v60, %v1374_v59 }
 0x92b   :  { %682 = vrot.lane.b32.xlu0 %v678_v61, %s1453_s1 }
 0x99d   :  { %v683_v62 = vpop.permute.xlu0 %682 }
 0x99e   :  { %1136 = vmatmul.mubr.msk.f32.vlgmr.msra.gmra.mrb[2].mxu0 %vm283_vm2, %v683_v62 }
 0x99f   :  { %1233 = vmatpush1.bf16.msra.mxu0 %v1542_v30  ;;  %850 = vmatprep.mubr.f32.mxu0 %v1452_v1 }
 0x9a0   :  { %1235 = vmatprep.subr.bf16.mxu0 %v1550_v35 }
 0x9a3   :  { %1237 = vmatpush1.bf16.msra.mxu0 %v1553_v37 }
 0x9a4   :  { %1239 = vmatprep.subr.bf16.mxu0 %v1557_v40 }
 0x9a7   :  { %1241 = vmatpush1.bf16.msra.mxu0 %v1567_v46 }
 0x9a8   :  { %1243 = vmatprep.subr.bf16.mxu0 %v1570_v47 }
 0x9ab   :  { %1245 = vmatpush1.bf16.msra.mxu0 %v1580_v51 }
 0x9ac   :  { %1247 = vmatprep.subr.bf16.mxu0 %v1537_v27 }
 0xa71   :  { %v752_v2 = vpop.f32.mrb[2].mxu0 }
 0xa72   :  { %v753_v3 = vadd.f32 %v752_v2, %v187_v63  ;;  %v754_v14 = vpop.f32.mrb[3].mxu0 }
 0xa73   :  { %v755_v17 = vadd.f32 %v754_v14, %v189_v0 }
 0xa74   :  { %v1137_v18 = vmul.f32 -1.442695, %v753_v3 }
 0xa75   :  { %v1138_v24 = vmul.f32 -1.442695, %v755_v17 }
 0xa76   :  { %1377 = vpow2.f32 %v1137_v18  ;;  %v1148_v18 = vld [vmem:[%s1745_s4] ss:$0 sm:$0xff]  ;;  %s1455_s4 = smov 32  }
 0xa77   :  { %1379 = vtanh.f32 %v755_v17 }
 0xa80   :  { %v1378_v19 = vpop.eup %1377 }
 0xa81   :  { %v760_v20 = vadd.f32 1.0, %v1378_v19  ;;  %v1380_v21 = vpop.eup %1379  ;;  %v205_v19 = vadd.f32 %v1630_v13, %v1522_v9 }
 0xa83   :  { %1381 = vrcp.f32 %v760_v20  ;;  %v207_v20 = vadd.f32 %v1632_v16, %v1525_v15 }
 0xa84   :  { %1383 = vpow2.f32 %v1138_v24 }
 0xa8d   :  { %v1382_v22 = vpop.eup %1381 }
 0xa8e   :  { %v771_v23 = vmul.f32 %v1382_v22, %v1380_v21  ;;  %v1384_v6 = vpop.eup %1383  ;;  %v770_v7 = vmul.f32 %v1382_v22, %v676_v58 }
 0xa8f   :  { %v767_v25 = vadd.f32 1.0, %v1384_v6 }
 0xa90   :  { %773 = vrot.lane.b32.xlu1 %v771_v23, %s1453_s1 }
 0xa91   :  { %1385 = vrcp.f32 %v767_v25 }
 0xa9b   :  { %v1386_v29 = vpop.eup %1385 }
 0xb02   :  { %v774_v26 = vpop.permute.xlu1 %773 }
 0xb03   :  { %v776_v28 = vadd.f32 %v774_v26, %v770_v7 }
 0xb05   :  { %1387 = vtanh.f32 %v776_v28 }
 0xb0f   :  { %v1388_v31 = vpop.eup %1387 }
 0xb10   :  { %v778_v32 = vmul.f32 %v1388_v31, %v1386_v29 }
 0xb12   :  { %782 = vrot.lane.b32.xlu0 %v778_v32, %s1453_s1 }
 0xb84   :  { %v783_v33 = vpop.permute.xlu0 %782 }
 0xb85   :  { %1139 = vmatmul.mubr.msk.f32.vlgmr.msra.gmra.mrb[4].mxu0 %vm283_vm2, %v783_v33 }
 0xb86   :  { %1249 = vmatpush1.bf16.msra.mxu0 %v1542_v30  ;;  %950 = vmatprep.mubr.f32.mxu0 %v1452_v1 }
 0xb87   :  { %1251 = vmatprep.subr.bf16.mxu0 %v1550_v35 }
 0xb8a   :  { %1253 = vmatpush1.bf16.msra.mxu0 %v1553_v37 }
 0xb8b   :  { %1255 = vmatprep.subr.bf16.mxu0 %v1557_v40 }
 0xb8e   :  { %1257 = vmatpush1.bf16.msra.mxu0 %v1567_v46 }
 0xb8f   :  { %1259 = vmatprep.subr.bf16.mxu0 %v1570_v47 }
 0xb92   :  { %1261 = vmatpush1.bf16.msra.mxu0 %v1580_v51 }
 0xb93   :  { %1263 = vmatprep.subr.bf16.mxu0 %v1537_v27 }
 0xc58   :  { %v852_v38 = vpop.f32.mrb[4].mxu0 }
 0xc59   :  { %v853_v39 = vadd.f32 %v852_v38, %v193_v34  ;;  %v854_v41 = vpop.f32.mrb[5].mxu0 }
 0xc5a   :  { %v855_v42 = vadd.f32 %v854_v41, %v195_v36 }
 0xc5b   :  { %v1140_v43 = vmul.f32 -1.442695, %v853_v39 }
 0xc5c   :  { %v1141_v27 = vmul.f32 -1.442695, %v855_v42 }
 0xc5d   :  { %1389 = vpow2.f32 %v1140_v43  ;;  %v1149_v43 = vld [vmem:[#allocation3] ss:$0 sm:$0xff] }
 0xc5e   :  { %1391 = vtanh.f32 %v855_v42 }
 0xc67   :  { %v1390_v44 = vpop.eup %1389 }
 0xc68   :  { %v860_v45 = vadd.f32 1.0, %v1390_v44  ;;  %v1392_v48 = vpop.eup %1391 }
 0xc6a   :  { %1393 = vrcp.f32 %v860_v45 }
 0xc6b   :  { %1395 = vpow2.f32 %v1141_v27 }
 0xc74   :  { %v1394_v49 = vpop.eup %1393 }
 0xc75   :  { %v871_v50 = vmul.f32 %v1394_v49, %v1392_v48  ;;  %v1396_v8 = vpop.eup %1395  ;;  %v870_v10 = vmul.f32 %v1394_v49, %v776_v28 }
 0xc76   :  { %v867_v52 = vadd.f32 1.0, %v1396_v8 }
 0xc77   :  { %873 = vrot.lane.b32.xlu1 %v871_v50, %s1453_s1 }
 0xc78   :  { %1397 = vrcp.f32 %v867_v52 }
 0xc82   :  { %v1398_v55 = vpop.eup %1397 }
 0xce9   :  { %v874_v53 = vpop.permute.xlu1 %873 }
 0xcea   :  { %v876_v54 = vadd.f32 %v874_v53, %v870_v10 }
 0xcec   :  { %1399 = vtanh.f32 %v876_v54 }
 0xcf6   :  { %v1400_v4 = vpop.eup %1399 }
 0xcf7   :  { %v878_v56 = vmul.f32 %v1400_v4, %v1398_v55 }
 0xcf9   :  { %882 = vrot.lane.b32.xlu0 %v878_v56, %s1453_s1 }
 0xd6b   :  { %v883_v5 = vpop.permute.xlu0 %882 }
 0xd6c   :  { %1142 = vmatmul.mubr.msk.f32.vlgmr.msra.gmra.mrb[6].mxu0 %vm283_vm2, %v883_v5 }
 0xd6d   :  { %1265 = vmatpush1.bf16.msra.mxu0 %v1542_v30  ;;  %1050 = vmatprep.mubr.f32.mxu0 %v1452_v1  ;;  %v201_v30 = vadd.f32 %v1628_v12, %v1525_v15 }
 0xd6e   :  { %1267 = vmatprep.subr.bf16.mxu0 %v1550_v35 }
 0xd71   :  { %1269 = vmatpush1.bf16.msra.mxu0 %v1553_v37 }
 0xd72   :  { %1271 = vmatprep.subr.bf16.mxu0 %v1557_v40 }
 0xd75   :  { %1273 = vmatpush1.bf16.msra.mxu0 %v1567_v46 }
 0xd76   :  { %1275 = vmatprep.subr.bf16.mxu0 %v1570_v47 }
 0xd79   :  { %1277 = vmatpush1.bf16.msra.mxu0 %v1580_v51 }
 0xe3f   :  { %v952_v58 = vpop.f32.mrb[6].mxu0 }
 0xe40   :  { %v953_v1 = vadd.f32 %v952_v58, %v199_v57  ;;  %v954_v59 = vpop.f32.mrb[7].mxu0 }
 0xe41   :  { %v955_v35 = vadd.f32 %v954_v59, %v201_v30 }
 0xe42   :  { %v1143_v60 = vmul.f32 -1.442695, %v953_v1 }
 0xe43   :  { %v1144_v51 = vmul.f32 -1.442695, %v955_v35 }
 0xe44   :  { %1401 = vpow2.f32 %v1143_v60 }
 0xe45   :  { %1403 = vtanh.f32 %v955_v35 }
 0xe4e   :  { %v1402_v37 = vpop.eup %1401 }
 0xe4f   :  { %v960_v40 = vadd.f32 1.0, %v1402_v37  ;;  %v1404_v46 = vpop.eup %1403 }
 0xe51   :  { %1405 = vrcp.f32 %v960_v40 }
 0xe52   :  { %1407 = vpow2.f32 %v1144_v51 }
 0xe5b   :  { %v1406_v47 = vpop.eup %1405 }
 0xe5c   :  { %v971_v61 = vmul.f32 %v1406_v47, %v1404_v46  ;;  %v1408_v11 = vpop.eup %1407  ;;  %v970_v12 = vmul.f32 %v1406_v47, %v876_v54 }
 0xe5d   :  { %v967_v62 = vadd.f32 1.0, %v1408_v11 }
 0xe5e   :  { %973 = vrot.lane.b32.xlu1 %v971_v61, %s1453_s1 }
 0xe5f   :  { %1409 = vrcp.f32 %v967_v62 }
 0xe69   :  { %v1410_v2 = vpop.eup %1409 }
 0xed0   :  { %v974_v63 = vpop.permute.xlu1 %973 }
 0xed1   :  { %v976_v0 = vadd.f32 %v974_v63, %v970_v12 }
 0xed3   :  { %1411 = vtanh.f32 %v976_v0 }
 0xedd   :  { %v1412_v3 = vpop.eup %1411 }
 0xede   :  { %v978_v14 = vmul.f32 %v1412_v3, %v1410_v2 }
 0xee0   :  { %982 = vrot.lane.b32.xlu0 %v978_v14, %s1453_s1 }
 0xee4   :  { %1085 = vrot.lane.b32.xlu0 %v1148_v18, %s1454_s10 }
 0xf52   :  { %v983_v17 = vpop.permute.xlu0 %982 }
 0xf53   :  { %1145 = vmatmul.mubr.msk.f32.vlgmr.msra.gmra.mrb[8].mxu0 %vm283_vm2, %v983_v17 }
 0xf56   :  { %v1086_v36 = vpop.permute.xlu0 %1085 }
0x1026   :  { %v1052_v21 = vpop.f32.mrb[8].mxu0 }
0x1027   :  { %v1053_v22 = vadd.f32 %v1052_v21, %v205_v19  ;;  %v1054_v23 = vpop.f32.mrb[9].mxu0 }
0x1028   :  { %v1055_v24 = vadd.f32 %v1054_v23, %v207_v20 }
0x1029   :  { %v1146_v6 = vmul.f32 -1.442695, %v1053_v22 }
0x102a   :  { %v1147_v31 = vmul.f32 -1.442695, %v1055_v24 }
0x102b   :  { %1413 = vpow2.f32 %v1146_v6 }
0x102c   :  { %1415 = vtanh.f32 %v1055_v24 }
0x1035   :  { %v1414_v25 = vpop.eup %1413 }
0x1036   :  { %v1060_v7 = vadd.f32 1.0, %v1414_v25  ;;  %v1416_v26 = vpop.eup %1415 }
0x1038   :  { %1417 = vrcp.f32 %v1060_v7 }
0x1039   :  { %1419 = vpow2.f32 %v1147_v31 }
0x1042   :  { %v1418_v28 = vpop.eup %1417 }
0x1043   :  { %v1071_v29 = vmul.f32 %v1418_v28, %v1416_v26  ;;  %v1420_v9 = vpop.eup %1419  ;;  %v1070_v15 = vmul.f32 %v1418_v28, %v976_v0 }
0x1044   :  { %v1067_v13 = vadd.f32 1.0, %v1420_v9 }
0x1045   :  { %1073 = vrot.lane.b32.xlu1 %v1071_v29, %s1453_s1 }
0x1046   :  { %1421 = vrcp.f32 %v1067_v13 }
0x1050   :  { %v1422_v33 = vpop.eup %1421 }
0x10b7   :  { %v1074_v16 = vpop.permute.xlu1 %1073 }
0x10b8   :  { %v1076_v32 = vadd.f32 %v1074_v16, %v1070_v15 }
0x10ba   :  { %1423 = vtanh.f32 %v1076_v32 }
0x10c4   :  { %v1424_v34 = vpop.eup %1423 }
0x10c5   :  { %v1078_v38 = vmul.f32 %v1424_v34, %v1422_v33 }
0x10c7   :  { %v1088_v39 = vmul.f32 %v1086_v36, %v1078_v38 }
0x10c9   :  { %1090 = vrot.lane.b32.xlu1 %v1088_v39, %s1455_s4 }
0x113b   :  { %v1091_v41 = vpop.permute.xlu1 %1090 }
0x113c   :  { %v1094_v42 = vsel %vm1093_vm3, %v1091_v41, 0.0 }
0x113d   :  { %1095 = vadd.xlane.f32.xlu0 %v1094_v42 }
0x11ca   :  { %v1096_v44 = vpop.xlane.xlu0 %1095 }
0x11cb   :  { %v1104_v45 = vadd.f32 %v1149_v43, %v1096_v44 }
0x11cd   :  { %1106 = vst.msk [vmem:[%s1747_s6] sm:$0xff] %vm1105_vm4, %v1104_v45 }
0x11ce   :  { %1111 = vsyncpa [#allocation5], 1 }

</bundles_post_ra>
